<compile_context>
chip_gen: v7x
topology: tpu7x:2x2x1
jax: 0.10.0
libtpu: 0.0.40
codegen_flags: <defaults>
</compile_context>

<pallas_src>
import functools

import jax
import jax.numpy as jnp
from jax.experimental import pallas as pl
from jax.experimental.pallas import tpu as pltpu

_VMEM_LIMIT_BYTES = 32 * 1024 * 1024   # raise v5e's 16 MiB default; safe on v6e/v7x
_FUSED_VMEM_BUDGET = 20 * 1024 * 1024  # use the single fused kernel below this


# ----------------------------- kernels ------------------------------------- #

def _linear_kernel(x_ref, w_ref, b_ref, z_ref):
    """z = x @ W + b for one row tile (bias add fused, f32 accumulate)."""
    z = jnp.dot(x_ref[...], w_ref[...], preferred_element_type=jnp.float32)
    z_ref[...] = (z + b_ref[...]).astype(z_ref.dtype)


def _adj_matmul_linear_kernel(adj_ref, z_ref, w_ref, b_ref, out_ref, acc_ref):
    """out[i] = relu(sum_k adj[i,k] @ z[k]) @ W + b.

    Layer-1 neighbourhood aggregation fused with relu and the layer-2 linear so
    the hidden activations stay in the f32 VMEM accumulator (never hit HBM).
    """
    k = pl.program_id(1)

    @pl.when(k == 0)
    def _():
        acc_ref[...] = jnp.zeros_like(acc_ref)

    acc_ref[...] += jnp.dot(adj_ref[...], z_ref[...],
                            preferred_element_type=jnp.float32)

    @pl.when(k == pl.num_programs(1) - 1)
    def _():
        h = jnp.maximum(acc_ref[...], 0.0).astype(w_ref.dtype)
        z2 = jnp.dot(h, w_ref[...], preferred_element_type=jnp.float32)
        out_ref[...] = (z2 + b_ref[...]).astype(out_ref.dtype)


def _adj_matmul_kernel(adj_ref, z_ref, out_ref, acc_ref):
    """out[i] = sum_k adj[i, k] @ z[k], f32 accumulator."""
    k = pl.program_id(1)

    @pl.when(k == 0)
    def _():
        acc_ref[...] = jnp.zeros_like(acc_ref)

    acc_ref[...] += jnp.dot(adj_ref[...], z_ref[...],
                            preferred_element_type=jnp.float32)

    @pl.when(k == pl.num_programs(1) - 1)
    def _():
        out_ref[...] = acc_ref[...].astype(out_ref.dtype)


def _gcn_fused_kernel(x_ref, adj_ref, w1_ref, b1_ref, w2_ref, b2_ref, out_ref):
    """Whole 2-layer GCN for small graphs: everything resident in VMEM."""
    adj = adj_ref[...]
    z1 = jnp.dot(x_ref[...], w1_ref[...], preferred_element_type=jnp.float32)
    z1 = (z1 + b1_ref[...]).astype(adj.dtype)
    h = jnp.dot(adj, z1, preferred_element_type=jnp.float32)
    h = jnp.maximum(h, 0.0).astype(w2_ref.dtype)
    z2 = jnp.dot(h, w2_ref[...], preferred_element_type=jnp.float32)
    z2 = (z2 + b2_ref[...]).astype(adj.dtype)
    out = jnp.dot(adj, z2, preferred_element_type=jnp.float32)
    out_ref[...] = out.astype(out_ref.dtype)


# ----------------------------- wrappers ------------------------------------ #

def _round_up(x, m):
    return (x + m - 1) // m * m


def _pad2(a, rows, cols):
    pr, pc = rows - a.shape[0], cols - a.shape[1]
    if pr or pc:
        a = jnp.pad(a, ((0, pr), (0, pc)))
    return a


def _linear(x_p, w_p, b_p, tm, out_dtype):
    n_pad, f_pad = x_p.shape
    h_pad = w_p.shape[1]
    return pl.pallas_call(
        _linear_kernel,
        out_shape=jax.ShapeDtypeStruct((n_pad, h_pad), out_dtype),
        grid_spec=pltpu.PrefetchScalarGridSpec(
            num_scalar_prefetch=0,
            grid=(n_pad // tm,),
            in_specs=[
                pl.BlockSpec((tm, f_pad), lambda i: (i, 0)),
                pl.BlockSpec((f_pad, h_pad), lambda i: (0, 0)),
                pl.BlockSpec((1, h_pad), lambda i: (0, 0)),
            ],
            out_specs=pl.BlockSpec((tm, h_pad), lambda i: (i, 0)),
        ),
        compiler_params=pltpu.CompilerParams(
            dimension_semantics=("parallel",),
            vmem_limit_bytes=_VMEM_LIMIT_BYTES),
        cost_estimate=pl.CostEstimate(
            flops=2 * n_pad * f_pad * h_pad,
            transcendentals=0,
            bytes_accessed=(x_p.size * x_p.dtype.itemsize
                            + w_p.size * w_p.dtype.itemsize
                            + n_pad * h_pad * jnp.dtype(out_dtype).itemsize)),
    )(x_p, w_p, b_p)


def _adj_matmul_linear(adj_p, z_p, w_p, b_p, tm, tk, out_dtype):
    """relu(adj @ z) @ W + b with the linear fused into the epilogue."""
    n_pad = adj_p.shape[0]
    h_pad = z_p.shape[1]
    o_pad = w_p.shape[1]
    return pl.pallas_call(
        _adj_matmul_linear_kernel,
        out_shape=jax.ShapeDtypeStruct((n_pad, o_pad), out_dtype),
        grid_spec=pltpu.PrefetchScalarGridSpec(
            num_scalar_prefetch=0,
            grid=(n_pad // tm, n_pad // tk),
            in_specs=[
                pl.BlockSpec((tm, tk), lambda i, k: (i, k)),
                pl.BlockSpec((tk, h_pad), lambda i, k: (k, 0)),
                pl.BlockSpec((h_pad, o_pad), lambda i, k: (0, 0)),
                pl.BlockSpec((1, o_pad), lambda i, k: (0, 0)),
            ],
            out_specs=pl.BlockSpec((tm, o_pad), lambda i, k: (i, 0)),
            scratch_shapes=[pltpu.VMEM((tm, h_pad), jnp.float32)],
        ),
        compiler_params=pltpu.CompilerParams(
            dimension_semantics=("parallel", "arbitrary"),
            vmem_limit_bytes=_VMEM_LIMIT_BYTES),
        cost_estimate=pl.CostEstimate(
            flops=2 * n_pad * n_pad * h_pad + 2 * n_pad * h_pad * o_pad,
            transcendentals=0,
            bytes_accessed=(adj_p.size * adj_p.dtype.itemsize
                            + z_p.size * z_p.dtype.itemsize * (n_pad // tm)
                            + w_p.size * w_p.dtype.itemsize
                            + n_pad * o_pad * jnp.dtype(out_dtype).itemsize)),
    )(adj_p, z_p, w_p, b_p)


def _adj_matmul(adj_p, z_p, tm, tk, out_dtype):
    n_pad = adj_p.shape[0]
    h_pad = z_p.shape[1]
    return pl.pallas_call(
        _adj_matmul_kernel,
        out_shape=jax.ShapeDtypeStruct((n_pad, h_pad), out_dtype),
        grid_spec=pltpu.PrefetchScalarGridSpec(
            num_scalar_prefetch=0,
            grid=(n_pad // tm, n_pad // tk),
            in_specs=[
                pl.BlockSpec((tm, tk), lambda i, k: (i, k)),
                pl.BlockSpec((tk, h_pad), lambda i, k: (k, 0)),
            ],
            out_specs=pl.BlockSpec((tm, h_pad), lambda i, k: (i, 0)),
            scratch_shapes=[pltpu.VMEM((tm, h_pad), jnp.float32)],
        ),
        compiler_params=pltpu.CompilerParams(
            dimension_semantics=("parallel", "arbitrary"),
            vmem_limit_bytes=_VMEM_LIMIT_BYTES),
        cost_estimate=pl.CostEstimate(
            flops=2 * n_pad * n_pad * h_pad,
            transcendentals=0,
            bytes_accessed=(adj_p.size * adj_p.dtype.itemsize
                            + z_p.size * z_p.dtype.itemsize * (n_pad // tm)
                            + n_pad * h_pad * jnp.dtype(out_dtype).itemsize)),
    )(adj_p, z_p)


def _gcn_fused(x_p, adj_p, w1_p, b1_p, w2_p, b2_p, out_dtype):
    n_pad, f_pad = x_p.shape
    h_pad = w1_p.shape[1]
    o_pad = w2_p.shape[1]
    return pl.pallas_call(
        _gcn_fused_kernel,
        out_shape=jax.ShapeDtypeStruct((n_pad, o_pad), out_dtype),
        grid_spec=pltpu.PrefetchScalarGridSpec(
            num_scalar_prefetch=0,
            grid=(1,),
            in_specs=[
                pl.BlockSpec((n_pad, f_pad), lambda i: (0, 0)),
                pl.BlockSpec((n_pad, n_pad), lambda i: (0, 0)),
                pl.BlockSpec((f_pad, h_pad), lambda i: (0, 0)),
                pl.BlockSpec((1, h_pad), lambda i: (0, 0)),
                pl.BlockSpec((h_pad, o_pad), lambda i: (0, 0)),
                pl.BlockSpec((1, o_pad), lambda i: (0, 0)),
            ],
            out_specs=pl.BlockSpec((n_pad, o_pad), lambda i: (0, 0)),
        ),
        compiler_params=pltpu.CompilerParams(
            dimension_semantics=("arbitrary",),
            vmem_limit_bytes=_VMEM_LIMIT_BYTES),
        cost_estimate=pl.CostEstimate(
            flops=(2 * n_pad * f_pad * h_pad + 2 * n_pad * n_pad * h_pad
                   + 2 * n_pad * h_pad * o_pad + 2 * n_pad * n_pad * o_pad),
            transcendentals=0,
            bytes_accessed=(x_p.size * x_p.dtype.itemsize
                            + adj_p.size * adj_p.dtype.itemsize
                            + w1_p.size * w1_p.dtype.itemsize
                            + w2_p.size * w2_p.dtype.itemsize
                            + n_pad * o_pad * jnp.dtype(out_dtype).itemsize)),
    )(x_p, adj_p, w1_p, b1_p, w2_p, b2_p)


def gcn_forward(x, adj, w1, b1, w2, b2, *, compute_dtype=jnp.float32,
                force_tiled=False):
    """x: (N, in), adj: (N, N), w1: (hidden, in), b1: (hidden,),
       w2: (out, hidden), b2: (out,). Returns (N, out) in x.dtype."""
    n, f = x.shape
    h = w1.shape[0]
    o = w2.shape[0]

    # Pad node dim / feature dims to lane-dense multiples of 128.
    n_pad = max(_round_up(n, 128), 128)
    f_pad = _round_up(f, 128)
    h_pad = _round_up(h, 128)
    o_pad = _round_up(o, 128)

    cdt = jnp.dtype(compute_dtype)
    out_dtype = x.dtype

    x_p = _pad2(x, n_pad, f_pad).astype(cdt)
    adj_p = _pad2(adj, n_pad, n_pad).astype(cdt)
    # Pre-transpose PyTorch (out, in) weights to (in, out); zero padding keeps
    # padded rows/columns from contributing. Biases stay f32 for the epilogue.
    w1_p = _pad2(w1.T, f_pad, h_pad).astype(cdt)
    w2_p = _pad2(w2.T, h_pad, o_pad).astype(cdt)
    b1_p = _pad2(b1.reshape(1, -1), 1, h_pad).astype(jnp.float32)
    b2_p = _pad2(b2.reshape(1, -1), 1, o_pad).astype(jnp.float32)

    # Conservative VMEM footprint estimate of the fully-fused single kernel
    # (double-buffered inputs/outputs + f32 intermediates).
    cs = cdt.itemsize
    os_ = jnp.dtype(out_dtype).itemsize
    fused_bytes = (2 * ((n_pad * f_pad + n_pad * n_pad + f_pad * h_pad
                         + h_pad * o_pad) * cs
                        + (h_pad + o_pad) * 4
                        + n_pad * o_pad * os_)
                   + 4 * n_pad * (f_pad + 2 * h_pad + 2 * o_pad))

    if (not force_tiled) and fused_bytes <= _FUSED_VMEM_BUDGET:
        # Small graph: whole forward pass in one kernel, no intermediate HBM.
        out_p = _gcn_fused(x_p, adj_p, w1_p, b1_p, w2_p, b2_p, out_dtype)
    else:
        tile = next(t for t in (512, 256, 128) if n_pad % t == 0)
        tm = tk = tile
        # Layer 1 linear: z1 = x @ W1^T + b1
        z1 = _linear(x_p, w1_p, b1_p, tm, cdt)
        # Fused: z2 = relu(adj @ z1) @ W2^T + b2  (hidden acts never hit HBM)
        z2 = _adj_matmul_linear(adj_p, z1, w2_p, b2_p, tm, tk, cdt)
        # Layer 2 aggregation: out = adj @ z2
        out_p = _adj_matmul(adj_p, z2, tm, tk, out_dtype)

    return out_p[:n, :o]


def gcn_reference(x, adj, w1, b1, w2, b2):
    h = jnp.maximum(adj @ (x @ w1.T + b1), 0.0)
    return adj @ (h @ w2.T + b2)


# ------------------------------- test --------------------------------------- #

if __name__ == "__main__":
    key = jax.random.PRNGKey(0)
    k_x, k_adj, k_w1, k_b1, k_w2, k_b2 = jax.random.split(key, 6)

    num_nodes, input_size, hidden_size, output_size = 8, 16, 32, 8

    x = jax.random.normal(k_x, (num_nodes, input_size), dtype=jnp.float32)
    adj = jax.random.uniform(k_adj, (num_nodes, num_nodes), dtype=jnp.float32)

    # Deterministic "synthetic checkpoint" params (PyTorch Linear layout).
    bound1 = 1.0 / (input_size ** 0.5)
    bound2 = 1.0 / (hidden_size ** 0.5)
    w1 = jax.random.uniform(k_w1, (hidden_size, input_size),
                            minval=-bound1, maxval=bound1, dtype=jnp.float32)
    b1 = jax.random.uniform(k_b1, (hidden_size,),
                            minval=-bound1, maxval=bound1, dtype=jnp.float32)
    w2 = jax.random.uniform(k_w2, (output_size, hidden_size),
                            minval=-bound2, maxval=bound2, dtype=jnp.float32)
    b2 = jax.random.uniform(k_b2, (output_size,),
                            minval=-bound2, maxval=bound2, dtype=jnp.float32)

    ref = gcn_reference(x, adj, w1, b1, w2, b2)

    # Fused small-graph path, f32: matches the PyTorch/f32 reference tightly.
    out_f32 = gcn_forward(x, adj, w1, b1, w2, b2, compute_dtype=jnp.float32)
    jax.block_until_ready(out_f32)
    assert out_f32.shape == (num_nodes, output_size)
    assert jnp.allclose(out_f32, ref, atol=1e-4, rtol=1e-4)

    # Fused small-graph path, bf16: half the adj VMEM traffic, f32 accumulation.
    out_bf16 = gcn_forward(x, adj, w1, b1, w2, b2, compute_dtype=jnp.bfloat16)
    jax.block_until_ready(out_bf16)
    assert out_bf16.shape == (num_nodes, output_size)
    assert jnp.allclose(out_bf16, ref, atol=5e-2, rtol=5e-2)

    # General tiled path (used automatically for large graphs), f32.
    out_tiled = gcn_forward(x, adj, w1, b1, w2, b2,
                            compute_dtype=jnp.float32, force_tiled=True)
    jax.block_until_ready(out_tiled)
    assert out_tiled.shape == (num_nodes, output_size)
    assert jnp.allclose(out_tiled, ref, atol=1e-4, rtol=1e-4)

    print("KERNEL_OK")
</pallas_src>

<mosaic_0001>
module attributes {stable_mosaic.version = 11 : i64} {
  func.func @_gcn_fused_kernel(%arg0: i32, %arg1: memref<128x128xf32, #tpu.memory_space<vmem>>, %arg2: memref<128x128xf32, #tpu.memory_space<vmem>>, %arg3: memref<128x128xf32, #tpu.memory_space<vmem>>, %arg4: memref<1x128xf32, #tpu.memory_space<vmem>>, %arg5: memref<128x128xf32, #tpu.memory_space<vmem>>, %arg6: memref<1x128xf32, #tpu.memory_space<vmem>>, %arg7: memref<128x128xf32, #tpu.memory_space<vmem>>) attributes {dimension_semantics = [#tpu.dimension_semantics<arbitrary>], iteration_bounds = array<i64: 1>, scalar_prefetch = 0 : i64, scratch_operands = 0 : i64, tpu.core_type = #tpu.core_type<tc>, window_params = [{pipeline_mode = #tpu.pipeline_mode<synchronous>, transform_indices = @transform_0, window_bounds = array<i64: 128, 128>}, {pipeline_mode = #tpu.pipeline_mode<synchronous>, transform_indices = @transform_1, window_bounds = array<i64: 128, 128>}, {pipeline_mode = #tpu.pipeline_mode<synchronous>, transform_indices = @transform_2, window_bounds = array<i64: 128, 128>}, {pipeline_mode = #tpu.pipeline_mode<synchronous>, transform_indices = @transform_3, window_bounds = array<i64: 1, 128>}, {pipeline_mode = #tpu.pipeline_mode<synchronous>, transform_indices = @transform_4, window_bounds = array<i64: 128, 128>}, {pipeline_mode = #tpu.pipeline_mode<synchronous>, transform_indices = @transform_5, window_bounds = array<i64: 1, 128>}, {pipeline_mode = #tpu.pipeline_mode<synchronous>, transform_indices = @transform_6, window_bounds = array<i64: 128, 128>}]} {
    %c0 = arith.constant 0 : index
    %c0_0 = arith.constant 0 : index
    %0 = vector.load %arg2[%c0, %c0_0] : memref<128x128xf32, #tpu.memory_space<vmem>>, vector<128x128xf32>
    %c0_1 = arith.constant 0 : index
    %c0_2 = arith.constant 0 : index
    %1 = vector.load %arg1[%c0_1, %c0_2] : memref<128x128xf32, #tpu.memory_space<vmem>>, vector<128x128xf32>
    %c0_3 = arith.constant 0 : index
    %c0_4 = arith.constant 0 : index
    %2 = vector.load %arg3[%c0_3, %c0_4] : memref<128x128xf32, #tpu.memory_space<vmem>>, vector<128x128xf32>
    %cst = arith.constant dense<0.000000e+00> : vector<128x128xf32>
    %3 = tpu.matmul %1, %2, %cst {dimension_numbers = #tpu.dot_dimension_numbers<[1], [0], [0], [1], [0, 0, 1, 1], [], []>} : vector<128x128xf32>, vector<128x128xf32>, vector<128x128xf32> -> vector<128x128xf32>
    %c0_5 = arith.constant 0 : index
    %c0_6 = arith.constant 0 : index
    %4 = vector.load %arg4[%c0_5, %c0_6] : memref<1x128xf32, #tpu.memory_space<vmem>>, vector<1x128xf32>
    %5 = vector.broadcast %4 : vector<1x128xf32> to vector<128x128xf32>
    %6 = arith.addf %3, %5 : vector<128x128xf32>
    %cst_7 = arith.constant dense<0.000000e+00> : vector<128x128xf32>
    %7 = tpu.matmul %0, %6, %cst_7 {dimension_numbers = #tpu.dot_dimension_numbers<[1], [0], [0], [1], [0, 0, 1, 1], [], []>} : vector<128x128xf32>, vector<128x128xf32>, vector<128x128xf32> -> vector<128x128xf32>
    %cst_8 = arith.constant 0.000000e+00 : f32
    %8 = vector.broadcast %cst_8 : f32 to vector<128x128xf32>
    %9 = arith.maximumf %7, %8 : vector<128x128xf32>
    %c0_9 = arith.constant 0 : index
    %c0_10 = arith.constant 0 : index
    %10 = vector.load %arg5[%c0_9, %c0_10] : memref<128x128xf32, #tpu.memory_space<vmem>>, vector<128x128xf32>
    %cst_11 = arith.constant dense<0.000000e+00> : vector<128x128xf32>
    %11 = tpu.matmul %9, %10, %cst_11 {dimension_numbers = #tpu.dot_dimension_numbers<[1], [0], [0], [1], [0, 0, 1, 1], [], []>} : vector<128x128xf32>, vector<128x128xf32>, vector<128x128xf32> -> vector<128x128xf32>
    %c0_12 = arith.constant 0 : index
    %c0_13 = arith.constant 0 : index
    %12 = vector.load %arg6[%c0_12, %c0_13] : memref<1x128xf32, #tpu.memory_space<vmem>>, vector<1x128xf32>
    %13 = vector.broadcast %12 : vector<1x128xf32> to vector<128x128xf32>
    %14 = arith.addf %11, %13 : vector<128x128xf32>
    %cst_14 = arith.constant dense<0.000000e+00> : vector<128x128xf32>
    %15 = tpu.matmul %0, %14, %cst_14 {dimension_numbers = #tpu.dot_dimension_numbers<[1], [0], [0], [1], [0, 0, 1, 1], [], []>} : vector<128x128xf32>, vector<128x128xf32>, vector<128x128xf32> -> vector<128x128xf32>
    %c0_15 = arith.constant 0 : index
    %c0_16 = arith.constant 0 : index
    %16 = vector.load %arg7[%c0_15, %c0_16] : memref<128x128xf32, #tpu.memory_space<vmem>>, vector<128x128xf32>
    tpu.vector_store %arg7[%c0_15, %c0_16], %15 {strides = array<i32>} : memref<128x128xf32, #tpu.memory_space<vmem>>, vector<128x128xf32>,
    return
  }
  func.func @transform_0(%arg0: i32) -> (i32, i32) {
    %c0_i32 = arith.constant 0 : i32
    %c0_i32_0 = arith.constant 0 : i32
    %c0_i32_1 = arith.constant 0 : i32
    return %c0_i32, %c0_i32_0 : i32, i32
  }
  func.func @transform_1(%arg0: i32) -> (i32, i32) {
    %c0_i32 = arith.constant 0 : i32
    %c0_i32_0 = arith.constant 0 : i32
    %c0_i32_1 = arith.constant 0 : i32
    return %c0_i32, %c0_i32_0 : i32, i32
  }
  func.func @transform_2(%arg0: i32) -> (i32, i32) {
    %c0_i32 = arith.constant 0 : i32
    %c0_i32_0 = arith.constant 0 : i32
    %c0_i32_1 = arith.constant 0 : i32
    return %c0_i32, %c0_i32_0 : i32, i32
  }
  func.func @transform_3(%arg0: i32) -> (i32, i32) {
    %c0_i32 = arith.constant 0 : i32
    %c0_i32_0 = arith.constant 0 : i32
    %c0_i32_1 = arith.constant 0 : i32
    return %c0_i32, %c0_i32_0 : i32, i32
  }
  func.func @transform_4(%arg0: i32) -> (i32, i32) {
    %c0_i32 = arith.constant 0 : i32
    %c0_i32_0 = arith.constant 0 : i32
    %c0_i32_1 = arith.constant 0 : i32
    return %c0_i32, %c0_i32_0 : i32, i32
  }
  func.func @transform_5(%arg0: i32) -> (i32, i32) {
    %c0_i32 = arith.constant 0 : i32
    %c0_i32_0 = arith.constant 0 : i32
    %c0_i32_1 = arith.constant 0 : i32
    return %c0_i32, %c0_i32_0 : i32, i32
  }
  func.func @transform_6(%arg0: i32) -> (i32, i32) {
    %c0_i32 = arith.constant 0 : i32
    %c0_i32_0 = arith.constant 0 : i32
    %c0_i32_1 = arith.constant 0 : i32
    return %c0_i32, %c0_i32_0 : i32, i32
  }
}

</mosaic_0001>

<bundles_post_ra>
// kernel: tpu_custom_call.1
= control target key start
LH: loop header
LB: loop body
LE: loop exit
PB: predicated region body
PF: predicated region fallthrough
CT: control target
= control target key end

     0   :  { %11 = vsyncpa [#allocation3], 0  ;;  %s1596_s0 = inlined_call_operand.hbm [shape: f32[128,128], index: 0, kind: input, shape index: {}]   ;;  %s1597_s1 = inlined_call_operand.hbm [shape: f32[128,128], index: 1, kind: input, shape index: {}]   ;;  %s1598_s2 = inlined_call_operand.hbm [shape: f32[128,128], index: 2, kind: input, shape index: {}]   ;;  %s1599_s3 = inlined_call_operand.vmem [shape: f32[1,128], index: 3, kind: input, shape index: {}]   ;;  %s1600_s4 = inlined_call_operand.hbm [shape: f32[128,128], index: 4, kind: input, shape index: {}]   ;;  %s1601_s5 = inlined_call_operand.vmem [shape: f32[1,128], index: 5, kind: input, shape index: {}]   ;;  %s1602_s6 = inlined_call_operand.hbm [shape: f32[128,128], index: 6, kind: output, shape index: {}]  }
   0x1   :  { %12 = vsyncpa [#allocation6], 0 }
   0x2   :  { %13 = vsyncpa [#allocation9], 0 }
   0x3   :  { %14 = vsyncpa [#allocation4], 0  ;;  %s1395_s21 = smov [#allocation5]   ;;  %s1396_s23 = smov [#allocation2]  }
   0x4   :  { %s32_s22 = sshll.u32 %s1395_s21, 4  ;;  %s20_s24 = sshll.u32 %s1396_s23, 4  ;;  %s33_s22 = int_to_ptr.vmem [resolvable:$true] %s32_s22  ;;  %s1437_s24 = int_to_ptr.vmem [resolvable:$true] %s20_s24 }
   0x5   :  { %s1277_s27 = scalar_lea.hbm %s1597_s1, 2048 }
   0x6   :  { %p1278_p0 = scmp.ne.s32.totalorder %s1597_s1, %s1277_s27  ;;  %p1281_p1 = scmp.lt.u32.totalorder %s1277_s27, %s1597_s1 }
   0x8   :  { %p1283_p2 = pnand %p1281_p1, %p1278_p0 }
   0xa   :  { %1286 = shalt.err (!%p1283_p2)
}
   0xb   :  { %s1287_s8 = scalar_lea.vmem %s33_s22, 2048  ;;  %p1292_p4 = scmp.lt.s32.totalorder %s33_s22, %s33_s22 }
   0xc   :  { %p1288_p3 = scmp.ne.s32.totalorder %s33_s22, %s1287_s8  ;;  %p1293_p5 = scmp.lt.s32.totalorder %s1287_s8, %s1287_s8 }
   0xe   :  { %p1294_p6 = por %p1293_p5, %p1292_p4 }
  0x10   :  { %p1295_p7 = pnand %p1294_p6, %p1288_p3 }
  0x12   :  { %1298 = shalt.err (!%p1295_p7)
}
  0x13   :  { %s1397_s9 = smov 128   ;;  %s1398_s10 = smov 8  }
  0x14   :  { %38 = dma.hbm_to_vmem [thread:$0]  %s1597_s1, 2048, %s33_s22, [#allocation6], %s1397_s9, %s1397_s9, %s1398_s10  }
  0x15   :  { %s1299_s15 = scalar_lea.hbm %s1596_s0, 2048 }
  0x16   :  { %p1300_p8 = scmp.ne.s32.totalorder %s1596_s0, %s1299_s15  ;;  %p1303_p9 = scmp.lt.u32.totalorder %s1299_s15, %s1596_s0 }
  0x18   :  { %p1305_p10 = pnand %p1303_p9, %p1300_p8 }
  0x1a   :  { %1308 = shalt.err (!%p1305_p10)
}
  0x1b   :  { %s1309_s20 = scalar_lea.vmem %s1437_s24, 2048  ;;  %p1314_p12 = scmp.lt.s32.totalorder %s1437_s24, %s1437_s24 }
  0x1c   :  { %p1310_p11 = scmp.ne.s32.totalorder %s1437_s24, %s1309_s20  ;;  %p1315_p13 = scmp.lt.s32.totalorder %s1309_s20, %s1309_s20 }
  0x1e   :  { %p1316_p0 = por %p1315_p13, %p1314_p12 }
  0x20   :  { %p1317_p1 = pnand %p1316_p0, %p1310_p11 }
  0x22   :  { %1320 = shalt.err (!%p1317_p1)
}
  0x23   :  { %26 = dma.hbm_to_vmem [thread:$0]  %s1596_s0, 2048, %s1437_s24, [#allocation3], %s1397_s9, %s1397_s9, %s1398_s10  }
  0x24   :  { %s1399_s22 = smov [#allocation7]   ;;  %s1400_s25 = smov [#allocation8]  }
  0x25   :  { %s44_s23 = sshll.u32 %s1399_s22, 4  ;;  %s58_s26 = sshll.u32 %s1400_s25, 4  ;;  %s45_s23 = int_to_ptr.vmem [resolvable:$true] %s44_s23  ;;  %s1474_s26 = int_to_ptr.vmem [resolvable:$true] %s58_s26 }
  0x26   :  { %s1321_s29 = scalar_lea.hbm %s1598_s2, 2048 }
  0x27   :  { %p1322_p2 = scmp.ne.s32.totalorder %s1598_s2, %s1321_s29  ;;  %p1325_p3 = scmp.lt.u32.totalorder %s1321_s29, %s1598_s2 }
  0x29   :  { %p1327_p4 = pnand %p1325_p3, %p1322_p2 }
  0x2b   :  { %1330 = shalt.err (!%p1327_p4)
}
  0x2c   :  { %s1331_s0 = scalar_lea.vmem %s45_s23, 2048  ;;  %p1336_p6 = scmp.lt.s32.totalorder %s45_s23, %s45_s23 }
  0x2d   :  { %p1332_p5 = scmp.ne.s32.totalorder %s45_s23, %s1331_s0  ;;  %p1337_p7 = scmp.lt.s32.totalorder %s1331_s0, %s1331_s0 }
  0x2f   :  { %p1338_p8 = por %p1337_p7, %p1336_p6 }
  0x31   :  { %p1339_p9 = pnand %p1338_p8, %p1332_p5 }
  0x33   :  { %1342 = shalt.err (!%p1339_p9)
}
  0x34   :  { %50 = dma.hbm_to_vmem [thread:$0]  %s1598_s2, 2048, %s45_s23, [#allocation6], %s1397_s9, %s1397_s9, %s1398_s10  }
  0x35   :  { %s1343_s15 = scalar_lea.hbm %s1600_s4, 2048 }
  0x36   :  { %p1344_p10 = scmp.ne.s32.totalorder %s1600_s4, %s1343_s15  ;;  %p1347_p11 = scmp.lt.u32.totalorder %s1343_s15, %s1600_s4 }
  0x38   :  { %p1349_p12 = pnand %p1347_p11, %p1344_p10 }
  0x3a   :  { %1352 = shalt.err (!%p1349_p12)
}
  0x3b   :  { %s1353_s20 = scalar_lea.vmem %s1474_s26, 2048  ;;  %p1358_p0 = scmp.lt.s32.totalorder %s1474_s26, %s1474_s26 }
  0x3c   :  { %p1354_p13 = scmp.ne.s32.totalorder %s1474_s26, %s1353_s20  ;;  %p1359_p1 = scmp.lt.s32.totalorder %s1353_s20, %s1353_s20 }
  0x3e   :  { %p1360_p2 = por %p1359_p1, %p1358_p0 }
  0x40   :  { %p1361_p3 = pnand %p1360_p2, %p1354_p13 }
  0x42   :  { %1364 = shalt.err (!%p1361_p3)
}
  0x43   :  { %64 = dma.hbm_to_vmem [thread:$0]  %s1600_s4, 2048, %s1474_s26, [#allocation9], %s1397_s9, %s1397_s9, %s1398_s10  }
  0x44   :  { %1387 = dma.done.wait [#allocation3], 2048  }
  0x45   :  { %1388 = vsyncadd [#allocation3], 4294965248 }
  0x46   :  { %1389 = dma.done.wait [#allocation6], 4096  }
  0x47   :  { %1390 = vsyncadd [#allocation6], 4294963200 }
  0x48   :  { %1391 = dma.done.wait [#allocation9], 2048  }
  0x49   :  { %1392 = vsyncadd [#allocation9], 4294965248  ;;  %v111_v0 = vld [vmem:[#allocation7] sm:$0xff]  ;;  %v112_v1 = vld [vmem:[#allocation7 + $0x8] sm:$0xff] }
  0x4a   :  { %v113_v2 = vld [vmem:[#allocation7 + $0x10] sm:$0xff]  ;;  %v1142_v3 = vpack.c.bf16 %v112_v1, %v111_v0  ;;  %v114_v4 = vld [vmem:[#allocation7 + $0x18] sm:$0xff]  ;;  %v115_v6 = vld [vmem:[#allocation7 + $0x20] sm:$0xff] }
  0x4b   :  { %v1146_v5 = vpack.c.bf16 %v114_v4, %v113_v2  ;;  %v116_v7 = vld [vmem:[#allocation7 + $0x28] sm:$0xff]  ;;  %v95_v9 = vld [vmem:[#allocation2] sm:$0xff]  ;;  %v117_v10 = vld [vmem:[#allocation7 + $0x30] sm:$0xff] }
  0x4c   :  { %1143 = vmatprep.subr.bf16.mxu0 %v1142_v3  ;;  %v1150_v8 = vpack.c.bf16 %v116_v7, %v115_v6  ;;  %v118_v11 = vld [vmem:[#allocation7 + $0x38] sm:$0xff]  ;;  %950 = vmatprep.mubr.f32.mxu0 %v95_v9  ;;  %v119_v13 = vld [vmem:[#allocation7 + $0x40] sm:$0xff]  ;;  %v120_v14 = vld [vmem:[#allocation7 + $0x48] sm:$0xff] }
  0x4d   :  { %1145 = vmatpush3.bf16.msra.mxu0 %v1142_v3  ;;  %v1154_v12 = vpack.c.bf16 %v118_v11, %v117_v10  ;;  %v1158_v15 = vpack.c.bf16 %v120_v14, %v119_v13  ;;  %v121_v16 = vld [vmem:[#allocation7 + $0x50] sm:$0xff]  ;;  %v122_v17 = vld [vmem:[#allocation7 + $0x58] sm:$0xff]  ;;  %v123_v19 = vld [vmem:[#allocation7 + $0x60] sm:$0xff] }
  0x4e   :  { %1147 = vmatprep.subr.bf16.mxu0 %v1146_v5  ;;  %v1162_v18 = vpack.c.bf16 %v122_v17, %v121_v16  ;;  %v124_v20 = vld [vmem:[#allocation7 + $0x68] sm:$0xff]  ;;  %v125_v22 = vld [vmem:[#allocation7 + $0x70] sm:$0xff]  ;;  %v126_v23 = vld [vmem:[#allocation7 + $0x78] sm:$0xff] }
  0x4f   :  { %v1166_v21 = vpack.c.bf16 %v124_v20, %v123_v19  ;;  %v1170_v24 = vpack.c.bf16 %v126_v23, %v125_v22  ;;  %v96_v25 = vld [vmem:[#allocation2 + $0x8] sm:$0xff]  ;;  %v97_v26 = vld [vmem:[#allocation2 + $0x10] sm:$0xff]  ;;  %v98_v27 = vld [vmem:[#allocation2 + $0x18] sm:$0xff] }
  0x50   :  { %v99_v28 = vld [vmem:[#allocation2 + $0x20] sm:$0xff]  ;;  %v100_v29 = vld [vmem:[#allocation2 + $0x28] sm:$0xff]  ;;  %v101_v30 = vld [vmem:[#allocation2 + $0x30] sm:$0xff] }
  0x51   :  { %1149 = vmatpush3.bf16.msra.mxu0 %v1146_v5  ;;  %v102_v31 = vld [vmem:[#allocation2 + $0x38] sm:$0xff]  ;;  %v103_v32 = vld [vmem:[#allocation2 + $0x40] sm:$0xff]  ;;  %v104_v33 = vld [vmem:[#allocation2 + $0x48] sm:$0xff] }
  0x52   :  { %1151 = vmatprep.subr.bf16.mxu0 %v1150_v8  ;;  %v105_v34 = vld [vmem:[#allocation2 + $0x50] sm:$0xff]  ;;  %v106_v35 = vld [vmem:[#allocation2 + $0x58] sm:$0xff]  ;;  %v107_v36 = vld [vmem:[#allocation2 + $0x60] sm:$0xff] }
  0x53   :  { %v108_v37 = vld [vmem:[#allocation2 + $0x68] sm:$0xff]  ;;  %v109_v38 = vld [vmem:[#allocation2 + $0x70] sm:$0xff]  ;;  %v110_v39 = vld [vmem:[#allocation2 + $0x78] sm:$0xff] }
  0x54   :  { %v1511_v40 = vld [vmem:[#allocation5] sm:$0xff]  ;;  %v441_v42 = vld [vmem:[#allocation8 + $0x8] sm:$0xff]  ;;  %v442_v43 = vld [vmem:[#allocation8 + $0x10] sm:$0xff] }
  0x55   :  { %1153 = vmatpush3.bf16.msra.mxu0 %v1150_v8  ;;  %1006 = vmatprep.mubr.f32.mxu1 %v1511_v40  ;;  %v440_v41 = vld [vmem:[#allocation8] sm:$0xff]  ;;  %v443_v45 = vld [vmem:[#allocation8 + $0x18] sm:$0xff]  ;;  %v445_v48 = vld [vmem:[#allocation8 + $0x28] sm:$0xff] }
  0x56   :  { %1155 = vmatprep.subr.bf16.mxu0 %v1154_v12  ;;  %v1206_v44 = vpack.c.bf16 %v441_v42, %v440_v41  ;;  %v1210_v46 = vpack.c.bf16 %v443_v45, %v442_v43  ;;  %v444_v47 = vld [vmem:[#allocation8 + $0x20] sm:$0xff]  ;;  %v446_v50 = vld [vmem:[#allocation8 + $0x30] sm:$0xff]  ;;  %v447_v51 = vld [vmem:[#allocation8 + $0x38] sm:$0xff] }
  0x57   :  { %v1214_v49 = vpack.c.bf16 %v445_v48, %v444_v47  ;;  %v1218_v52 = vpack.c.bf16 %v447_v51, %v446_v50  ;;  %v448_v53 = vld [vmem:[#allocation8 + $0x40] sm:$0xff]  ;;  %v449_v54 = vld [vmem:[#allocation8 + $0x48] sm:$0xff]  ;;  %v450_v56 = vld [vmem:[#allocation8 + $0x50] sm:$0xff] }
  0x58   :  { %v1222_v55 = vpack.c.bf16 %v449_v54, %v448_v53  ;;  %v451_v57 = vld [vmem:[#allocation8 + $0x58] sm:$0xff]  ;;  %v452_v59 = vld [vmem:[#allocation8 + $0x60] sm:$0xff]  ;;  %v453_v60 = vld [vmem:[#allocation8 + $0x68] sm:$0xff] }
  0x59   :  { %1157 = vmatpush3.bf16.msra.mxu0 %v1154_v12  ;;  %v1226_v58 = vpack.c.bf16 %v451_v57, %v450_v56  ;;  %v1230_v61 = vpack.c.bf16 %v453_v60, %v452_v59  ;;  %v788_v62 = vld [vmem:[%s1599_s3] ss:$0 sm:$0xff]  ;;  %v1519_v41 = vld [vmem:[#allocation5 + $0x10] sm:$0xff]  ;;  %v1523_v42 = vld [vmem:[#allocation5 + $0x18] sm:$0xff] }
  0x5a   :  { %1159 = vmatprep.subr.bf16.mxu0 %v1158_v15  ;;  %v1525_v43 = vld [vmem:[#allocation5 + $0x20] sm:$0xff]  ;;  %v1531_v45 = vld [vmem:[#allocation5 + $0x30] sm:$0xff]  ;;  %v1541_v48 = vld [vmem:[#allocation5 + $0x48] sm:$0xff] }
  0x5b   :  { %v1537_v47 = vld [vmem:[#allocation5 + $0x40] sm:$0xff]  ;;  %v1547_v50 = vld [vmem:[#allocation5 + $0x58] sm:$0xff]  ;;  %v1555_v53 = vld [vmem:[#allocation5 + $0x70] sm:$0xff] }
  0x5c   :  { %v1549_v51 = vld [vmem:[#allocation5 + $0x60] sm:$0xff]  ;;  %v1559_v54 = vld [vmem:[#allocation5 + $0x78] sm:$0xff] }
  0x5d   :  { %1161 = vmatpush3.bf16.msra.mxu0 %v1158_v15  ;;  %v455_v56 = vld [vmem:[#allocation8 + $0x78] sm:$0xff] }
  0x5e   :  { %1163 = vmatprep.subr.bf16.mxu0 %v1162_v18 }
  0x61   :  { %1165 = vmatpush3.bf16.msra.mxu0 %v1162_v18 }
  0x62   :  { %1167 = vmatprep.subr.bf16.mxu0 %v1166_v21 }
  0x65   :  { %1169 = vmatpush3.bf16.msra.mxu0 %v1166_v21 }
  0x66   :  { %1171 = vmatprep.subr.bf16.mxu0 %v1170_v24 }
  0x69   :  { %1173 = vmatpush3.bf16.msra.mxu0 %v1170_v24 }
  0x6a   :  { %1207 = vmatprep.subr.bf16.mxu0 %v1206_v44 }
  0x6c   :  { %951 = vmatmul.mubr.f32.vlgmr.msra.gmra.mrb[0].mxu0 %v96_v25 }
  0x6d   :  { %953 = vmatprep.mubr.f32.mxu0 %v97_v26  ;;  %1209 = vmatpush3.bf16.msra.mxu0 %v1206_v44  ;;  %v1529_v44 = vld [vmem:[#allocation5 + $0x28] sm:$0xff] }
  0x6e   :  { %1211 = vmatprep.subr.bf16.mxu0 %v1210_v46 }
  0x70   :  { %954 = vmatmul.mubr.f32.gmra.mrb[2].mxu0 %v98_v27 }
  0x71   :  { %956 = vmatprep.mubr.f32.mxu0 %v99_v28  ;;  %1213 = vmatpush3.bf16.msra.mxu0 %v1210_v46  ;;  %v1535_v46 = vld [vmem:[#allocation5 + $0x38] sm:$0xff] }
  0x72   :  { %1215 = vmatprep.subr.bf16.mxu0 %v1214_v49 }
  0x74   :  { %957 = vmatmul.mubr.f32.gmra.mrb[4].mxu0 %v100_v29 }
  0x75   :  { %959 = vmatprep.mubr.f32.mxu0 %v101_v30  ;;  %1217 = vmatpush3.bf16.msra.mxu0 %v1214_v49  ;;  %v1543_v49 = vld [vmem:[#allocation5 + $0x50] sm:$0xff] }
  0x76   :  { %1219 = vmatprep.subr.bf16.mxu0 %v1218_v52 }
  0x78   :  { %960 = vmatmul.mubr.f32.gmra.mrb[6].mxu0 %v102_v31 }
  0x79   :  { %962 = vmatprep.mubr.f32.mxu0 %v103_v32  ;;  %1221 = vmatpush3.bf16.msra.mxu0 %v1218_v52  ;;  %v1553_v52 = vld [vmem:[#allocation5 + $0x68] sm:$0xff] }
  0x7a   :  { %1223 = vmatprep.subr.bf16.mxu0 %v1222_v55 }
  0x7c   :  { %963 = vmatmul.mubr.f32.gmra.mrb[8].mxu0 %v104_v33 }
  0x7d   :  { %965 = vmatprep.mubr.f32.mxu0 %v105_v34  ;;  %1225 = vmatpush3.bf16.msra.mxu0 %v1222_v55  ;;  %v454_v55 = vld [vmem:[#allocation8 + $0x70] sm:$0xff] }
  0x7e   :  { %1227 = vmatprep.subr.bf16.mxu0 %v1226_v58  ;;  %v1234_v57 = vpack.c.bf16 %v455_v56, %v454_v55 }
  0x80   :  { %966 = vmatmul.mubr.f32.gmra.mrb[10].mxu0 %v106_v35 }
  0x81   :  { %968 = vmatprep.mubr.f32.mxu0 %v107_v36  ;;  %1229 = vmatpush3.bf16.msra.mxu0 %v1226_v58 }
  0x82   :  { %1231 = vmatprep.subr.bf16.mxu0 %v1230_v61 }
  0x84   :  { %969 = vmatmul.mubr.f32.gmra.mrb[12].mxu0 %v108_v37 }
  0x85   :  { %971 = vmatprep.mubr.f32.mxu0 %v109_v38  ;;  %1233 = vmatpush3.bf16.msra.mxu0 %v1230_v61 }
  0x86   :  { %1235 = vmatprep.subr.bf16.mxu0 %v1234_v57 }
  0x88   :  { %972 = vmatmul.mubr.f32.gmra.mrb[14].mxu0 %v110_v39  ;;  %v1517_v39 = vld [vmem:[#allocation5 + $0x8] sm:$0xff] }
  0x89   :  { %1237 = vmatpush3.bf16.msra.mxu0 %v1234_v57 }
 0x13f   :  { %v952_v63 = vpop.f32.mrb[0].mxu0 }
 0x140   :  { %v206_v0 = vadd.f32 %v952_v63, %v788_v62  ;;  %v200_v1 = vpop.f32.mrb[1].mxu0 }
 0x141   :  { %v201_v2 = vadd.f32 %v788_v62, %v200_v1 }
 0x143   :  { %v955_v3 = vpop.f32.mrb[2].mxu0  ;;  %v1174_v4 = vpack.c.bf16 %v206_v0, %v201_v2 }
 0x144   :  { %v216_v5 = vadd.f32 %v955_v3, %v788_v62  ;;  %v210_v6 = vpop.f32.mrb[3].mxu0 }
 0x145   :  { %v211_v7 = vadd.f32 %v788_v62, %v210_v6  ;;  %1175 = vmatprep.subr.bf16.mxu1 %v1174_v4 }
 0x146   :  { %1177 = vmatpush3.bf16.msra.mxu1 %v1174_v4 }
 0x147   :  { %v1178_v8 = vpack.c.bf16 %v216_v5, %v211_v7  ;;  %v958_v9 = vpop.f32.mrb[4].mxu0 }
 0x148   :  { %v226_v10 = vadd.f32 %v958_v9, %v788_v62  ;;  %v220_v11 = vpop.f32.mrb[5].mxu0 }
 0x149   :  { %v221_v12 = vadd.f32 %v788_v62, %v220_v11  ;;  %1179 = vmatprep.subr.bf16.mxu1 %v1178_v8 }
 0x14a   :  { %1181 = vmatpush3.bf16.msra.mxu1 %v1178_v8 }
 0x14b   :  { %v1182_v13 = vpack.c.bf16 %v226_v10, %v221_v12  ;;  %v961_v14 = vpop.f32.mrb[6].mxu0 }
 0x14c   :  { %v236_v15 = vadd.f32 %v961_v14, %v788_v62  ;;  %v230_v16 = vpop.f32.mrb[7].mxu0 }
 0x14d   :  { %v231_v17 = vadd.f32 %v788_v62, %v230_v16  ;;  %1183 = vmatprep.subr.bf16.mxu1 %v1182_v13 }
 0x14e   :  { %1185 = vmatpush3.bf16.msra.mxu1 %v1182_v13 }
 0x14f   :  { %v1186_v18 = vpack.c.bf16 %v236_v15, %v231_v17  ;;  %v964_v19 = vpop.f32.mrb[8].mxu0 }
 0x150   :  { %v246_v20 = vadd.f32 %v964_v19, %v788_v62  ;;  %v240_v21 = vpop.f32.mrb[9].mxu0 }
 0x151   :  { %v241_v22 = vadd.f32 %v788_v62, %v240_v21  ;;  %1187 = vmatprep.subr.bf16.mxu1 %v1186_v18 }
 0x152   :  { %1189 = vmatpush3.bf16.msra.mxu1 %v1186_v18 }
 0x153   :  { %v1190_v23 = vpack.c.bf16 %v246_v20, %v241_v22  ;;  %v967_v24 = vpop.f32.mrb[10].mxu0 }
 0x154   :  { %v256_v25 = vadd.f32 %v967_v24, %v788_v62  ;;  %v250_v26 = vpop.f32.mrb[11].mxu0 }
 0x155   :  { %v251_v27 = vadd.f32 %v788_v62, %v250_v26  ;;  %1191 = vmatprep.subr.bf16.mxu1 %v1190_v23 }
 0x156   :  { %1193 = vmatpush3.bf16.msra.mxu1 %v1190_v23 }
 0x157   :  { %v1194_v28 = vpack.c.bf16 %v256_v25, %v251_v27  ;;  %v970_v29 = vpop.f32.mrb[12].mxu0  ;;  %v789_v25 = vld [vmem:[%s1601_s5] ss:$0 sm:$0xff]  ;;  %s1401_s5 = smov [#allocation10]  }
 0x158   :  { %v266_v30 = vadd.f32 %v970_v29, %v788_v62  ;;  %v260_v31 = vpop.f32.mrb[13].mxu0  ;;  %s774_s23 = sshll.u32 %s1401_s5, 4  ;;  %s775_s23 = int_to_ptr.vmem [resolvable:$true] %s774_s23 }
 0x159   :  { %v261_v32 = vadd.f32 %v788_v62, %v260_v31  ;;  %1195 = vmatprep.subr.bf16.mxu1 %v1194_v28  ;;  %s1365_s25 = scalar_lea.vmem %s775_s23, 2048  ;;  %p1370_p5 = scmp.lt.s32.totalorder %s775_s23, %s775_s23 }
 0x15a   :  { %1197 = vmatpush3.bf16.msra.mxu1 %v1194_v28  ;;  %p1366_p4 = scmp.ne.s32.totalorder %s775_s23, %s1365_s25  ;;  %p1371_p6 = scmp.lt.s32.totalorder %s1365_s25, %s1365_s25 }
 0x15b   :  { %v1198_v33 = vpack.c.bf16 %v266_v30, %v261_v32  ;;  %v973_v34 = vpop.f32.mrb[14].mxu0 }
 0x15c   :  { %v276_v35 = vadd.f32 %v973_v34, %v788_v62  ;;  %v270_v36 = vpop.f32.mrb[15].mxu0  ;;  %p1372_p7 = por %p1371_p6, %p1370_p5 }
 0x15d   :  { %v271_v37 = vadd.f32 %v788_v62, %v270_v36  ;;  %1199 = vmatprep.subr.bf16.mxu1 %v1198_v33 }
 0x15e   :  { %1201 = vmatpush3.bf16.msra.mxu1 %v1198_v33  ;;  %p1373_p8 = pnand %p1372_p7, %p1366_p4 }
 0x15f   :  { %v1202_v38 = vpack.c.bf16 %v276_v35, %v271_v37 }
 0x161   :  { %1203 = vmatprep.subr.bf16.mxu1 %v1202_v38 }
 0x162   :  { %1205 = vmatpush3.bf16.msra.mxu1 %v1202_v38 }
 0x165   :  { %1007 = vmatmul.mubr.f32.vlgmr.msra.gmra.mrb[0].mxu1 %v1517_v39 }
 0x166   :  { %1009 = vmatprep.mubr.f32.mxu1 %v1519_v41 }
 0x169   :  { %1010 = vmatmul.mubr.f32.gmra.mrb[2].mxu1 %v1523_v42 }
 0x16a   :  { %1012 = vmatprep.mubr.f32.mxu1 %v1525_v43 }
 0x16d   :  { %1013 = vmatmul.mubr.f32.gmra.mrb[4].mxu1 %v1529_v44 }
 0x16e   :  { %1015 = vmatprep.mubr.f32.mxu1 %v1531_v45 }
 0x171   :  { %1016 = vmatmul.mubr.f32.gmra.mrb[6].mxu1 %v1535_v46 }
 0x172   :  { %1018 = vmatprep.mubr.f32.mxu1 %v1537_v47 }
 0x175   :  { %1019 = vmatmul.mubr.f32.gmra.mrb[8].mxu1 %v1541_v48 }
 0x176   :  { %1021 = vmatprep.mubr.f32.mxu1 %v1543_v49 }
 0x179   :  { %1022 = vmatmul.mubr.f32.gmra.mrb[10].mxu1 %v1547_v50 }
 0x17a   :  { %1024 = vmatprep.mubr.f32.mxu1 %v1549_v51 }
 0x17d   :  { %1025 = vmatmul.mubr.f32.gmra.mrb[12].mxu1 %v1553_v52 }
 0x17e   :  { %1027 = vmatprep.mubr.f32.mxu1 %v1555_v53 }
 0x181   :  { %1028 = vmatmul.mubr.f32.gmra.mrb[14].mxu1 %v1559_v54 }
 0x182   :  { %1118 = vmatprep.mubr.f32.mxu1 %v1511_v40 }
 0x238   :  { %v1008_v58 = vpop.f32.mrb[0].mxu1 }
 0x239   :  { %v345_v59 = vpop.f32.mrb[1].mxu1  ;;  %v425_v61 = vmax.f32 %v1008_v58, 0.0 }
 0x23a   :  { %v424_v60 = vmax.f32 %v345_v59, 0.0 }
 0x23c   :  { %v1011_v62 = vpop.f32.mrb[2].mxu1  ;;  %1062 = vmatprep.mubr.f32.mxu0 %v424_v60 }
 0x23d   :  { %v355_v63 = vpop.f32.mrb[3].mxu1  ;;  %1063 = vmatmul.mubr.f32.vlgmr.msra.gmra.mrb[16].mxu0 %v425_v61  ;;  %v427_v1 = vmax.f32 %v1011_v62, 0.0 }
 0x23e   :  { %v426_v0 = vmax.f32 %v355_v63, 0.0 }
 0x240   :  { %v1014_v2 = vpop.f32.mrb[4].mxu1  ;;  %1065 = vmatprep.mubr.f32.mxu0 %v426_v0 }
 0x241   :  { %v365_v3 = vpop.f32.mrb[5].mxu1  ;;  %1066 = vmatmul.mubr.f32.gmra.mrb[18].mxu0 %v427_v1  ;;  %v429_v4 = vmax.f32 %v1014_v2, 0.0 }
 0x242   :  { %v428_v40 = vmax.f32 %v365_v3, 0.0 }
 0x244   :  { %v1017_v5 = vpop.f32.mrb[6].mxu1  ;;  %1068 = vmatprep.mubr.f32.mxu0 %v428_v40 }
 0x245   :  { %v375_v6 = vpop.f32.mrb[7].mxu1  ;;  %1069 = vmatmul.mubr.f32.gmra.mrb[20].mxu0 %v429_v4  ;;  %v431_v8 = vmax.f32 %v1017_v5, 0.0 }
 0x246   :  { %v430_v7 = vmax.f32 %v375_v6, 0.0 }
 0x248   :  { %v1020_v9 = vpop.f32.mrb[8].mxu1  ;;  %1071 = vmatprep.mubr.f32.mxu0 %v430_v7 }
 0x249   :  { %v385_v10 = vpop.f32.mrb[9].mxu1  ;;  %1072 = vmatmul.mubr.f32.gmra.mrb[22].mxu0 %v431_v8  ;;  %v433_v12 = vmax.f32 %v1020_v9, 0.0 }
 0x24a   :  { %v432_v11 = vmax.f32 %v385_v10, 0.0 }
 0x24c   :  { %v1023_v13 = vpop.f32.mrb[10].mxu1  ;;  %1074 = vmatprep.mubr.f32.mxu0 %v432_v11 }
 0x24d   :  { %v395_v14 = vpop.f32.mrb[11].mxu1  ;;  %1075 = vmatmul.mubr.f32.gmra.mrb[24].mxu0 %v433_v12  ;;  %v435_v16 = vmax.f32 %v1023_v13, 0.0 }
 0x24e   :  { %v434_v15 = vmax.f32 %v395_v14, 0.0 }
 0x250   :  { %v1026_v17 = vpop.f32.mrb[12].mxu1  ;;  %1077 = vmatprep.mubr.f32.mxu0 %v434_v15 }
 0x251   :  { %v405_v18 = vpop.f32.mrb[13].mxu1  ;;  %1078 = vmatmul.mubr.f32.gmra.mrb[26].mxu0 %v435_v16  ;;  %v437_v20 = vmax.f32 %v1026_v17, 0.0 }
 0x252   :  { %v436_v19 = vmax.f32 %v405_v18, 0.0 }
 0x254   :  { %v1029_v21 = vpop.f32.mrb[14].mxu1  ;;  %1080 = vmatprep.mubr.f32.mxu0 %v436_v19 }
 0x255   :  { %v415_v22 = vpop.f32.mrb[15].mxu1  ;;  %1081 = vmatmul.mubr.f32.gmra.mrb[28].mxu0 %v437_v20  ;;  %v439_v24 = vmax.f32 %v1029_v21, 0.0 }
 0x256   :  { %v438_v23 = vmax.f32 %v415_v22, 0.0 }
 0x258   :  { %1083 = vmatprep.mubr.f32.mxu0 %v438_v23 }
 0x259   :  { %1084 = vmatmul.mubr.f32.gmra.mrb[30].mxu0 %v439_v24 }
 0x310   :  { %v1064_v26 = vpop.f32.mrb[16].mxu0 }
 0x311   :  { %v535_v27 = vadd.f32 %v1064_v26, %v789_v25  ;;  %v529_v28 = vpop.f32.mrb[17].mxu0 }
 0x312   :  { %v530_v29 = vadd.f32 %v789_v25, %v529_v28 }
 0x314   :  { %v1238_v30 = vpack.c.bf16 %v535_v27, %v530_v29  ;;  %v1067_v31 = vpop.f32.mrb[18].mxu0 }
 0x315   :  { %v545_v32 = vadd.f32 %v1067_v31, %v789_v25  ;;  %v539_v33 = vpop.f32.mrb[19].mxu0 }
 0x316   :  { %v540_v34 = vadd.f32 %v789_v25, %v539_v33  ;;  %1239 = vmatprep.subr.bf16.mxu1 %v1238_v30 }
 0x317   :  { %1241 = vmatpush3.bf16.msra.mxu1 %v1238_v30 }
 0x318   :  { %v1242_v35 = vpack.c.bf16 %v545_v32, %v540_v34  ;;  %v1070_v36 = vpop.f32.mrb[20].mxu0 }
 0x319   :  { %v555_v37 = vadd.f32 %v1070_v36, %v789_v25  ;;  %v549_v38 = vpop.f32.mrb[21].mxu0 }
 0x31a   :  { %v550_v55 = vadd.f32 %v789_v25, %v549_v38  ;;  %1243 = vmatprep.subr.bf16.mxu1 %v1242_v35 }
 0x31b   :  { %1245 = vmatpush3.bf16.msra.mxu1 %v1242_v35 }
 0x31c   :  { %v1246_v56 = vpack.c.bf16 %v555_v37, %v550_v55  ;;  %v1073_v57 = vpop.f32.mrb[22].mxu0 }
 0x31d   :  { %v565_v58 = vadd.f32 %v1073_v57, %v789_v25  ;;  %v559_v59 = vpop.f32.mrb[23].mxu0 }
 0x31e   :  { %v560_v60 = vadd.f32 %v789_v25, %v559_v59  ;;  %1247 = vmatprep.subr.bf16.mxu1 %v1246_v56 }
 0x31f   :  { %1249 = vmatpush3.bf16.msra.mxu1 %v1246_v56 }
 0x320   :  { %v1250_v61 = vpack.c.bf16 %v565_v58, %v560_v60  ;;  %v1076_v62 = vpop.f32.mrb[24].mxu0 }
 0x321   :  { %v575_v63 = vadd.f32 %v1076_v62, %v789_v25  ;;  %v569_v0 = vpop.f32.mrb[25].mxu0 }
 0x322   :  { %v570_v1 = vadd.f32 %v789_v25, %v569_v0  ;;  %1251 = vmatprep.subr.bf16.mxu1 %v1250_v61 }
 0x323   :  { %1253 = vmatpush3.bf16.msra.mxu1 %v1250_v61 }
 0x324   :  { %v1254_v2 = vpack.c.bf16 %v575_v63, %v570_v1  ;;  %v1079_v3 = vpop.f32.mrb[26].mxu0 }
 0x325   :  { %v585_v40 = vadd.f32 %v1079_v3, %v789_v25  ;;  %v579_v4 = vpop.f32.mrb[27].mxu0 }
 0x326   :  { %v580_v5 = vadd.f32 %v789_v25, %v579_v4  ;;  %1255 = vmatprep.subr.bf16.mxu1 %v1254_v2 }
 0x327   :  { %1257 = vmatpush3.bf16.msra.mxu1 %v1254_v2 }
 0x328   :  { %v1258_v6 = vpack.c.bf16 %v585_v40, %v580_v5  ;;  %v1082_v7 = vpop.f32.mrb[28].mxu0 }
 0x329   :  { %v595_v8 = vadd.f32 %v1082_v7, %v789_v25  ;;  %v589_v9 = vpop.f32.mrb[29].mxu0 }
 0x32a   :  { %v590_v10 = vadd.f32 %v789_v25, %v589_v9  ;;  %1259 = vmatprep.subr.bf16.mxu1 %v1258_v6 }
 0x32b   :  { %1261 = vmatpush3.bf16.msra.mxu1 %v1258_v6 }
 0x32c   :  { %v1262_v11 = vpack.c.bf16 %v595_v8, %v590_v10  ;;  %v1085_v12 = vpop.f32.mrb[30].mxu0 }
 0x32d   :  { %v605_v13 = vadd.f32 %v1085_v12, %v789_v25  ;;  %v599_v14 = vpop.f32.mrb[31].mxu0 }
 0x32e   :  { %v600_v15 = vadd.f32 %v789_v25, %v599_v14  ;;  %1263 = vmatprep.subr.bf16.mxu1 %v1262_v11 }
 0x32f   :  { %1265 = vmatpush3.bf16.msra.mxu1 %v1262_v11 }
 0x330   :  { %v1266_v16 = vpack.c.bf16 %v605_v13, %v600_v15 }
 0x332   :  { %1267 = vmatprep.subr.bf16.mxu1 %v1266_v16 }
 0x333   :  { %1269 = vmatpush3.bf16.msra.mxu1 %v1266_v16 }
 0x336   :  { %1119 = vmatmul.mubr.f32.vlgmr.msra.gmra.mrb[16].mxu1 %v1517_v39 }
 0x337   :  { %1121 = vmatprep.mubr.f32.mxu1 %v1519_v41 }
 0x33a   :  { %1122 = vmatmul.mubr.f32.gmra.mrb[18].mxu1 %v1523_v42 }
 0x33b   :  { %1124 = vmatprep.mubr.f32.mxu1 %v1525_v43 }
 0x33e   :  { %1125 = vmatmul.mubr.f32.gmra.mrb[20].mxu1 %v1529_v44 }
 0x33f   :  { %1127 = vmatprep.mubr.f32.mxu1 %v1531_v45 }
 0x342   :  { %1128 = vmatmul.mubr.f32.gmra.mrb[22].mxu1 %v1535_v46 }
 0x343   :  { %1130 = vmatprep.mubr.f32.mxu1 %v1537_v47 }
 0x346   :  { %1131 = vmatmul.mubr.f32.gmra.mrb[24].mxu1 %v1541_v48 }
 0x347   :  { %1133 = vmatprep.mubr.f32.mxu1 %v1543_v49 }
 0x34a   :  { %1134 = vmatmul.mubr.f32.gmra.mrb[26].mxu1 %v1547_v50 }
 0x34b   :  { %1136 = vmatprep.mubr.f32.mxu1 %v1549_v51 }
 0x34e   :  { %1137 = vmatmul.mubr.f32.gmra.mrb[28].mxu1 %v1553_v52 }
 0x34f   :  { %1139 = vmatprep.mubr.f32.mxu1 %v1555_v53 }
 0x352   :  { %1140 = vmatmul.mubr.f32.gmra.mrb[30].mxu1 %v1559_v54 }
 0x409   :  { %v1120_v39 = vpop.f32.mrb[16].mxu1 }
 0x40a   :  { %754 = vst [vmem:[#allocation10 + $0x8] sm:$0xff] %v1120_v39  ;;  %v674_v41 = vpop.f32.mrb[17].mxu1 }
 0x40b   :  { %753 = vst [vmem:[#allocation10] sm:$0xff] %v674_v41 }
 0x40d   :  { %v1123_v42 = vpop.f32.mrb[18].mxu1 }
 0x40e   :  { %756 = vst [vmem:[#allocation10 + $0x18] sm:$0xff] %v1123_v42  ;;  %v684_v43 = vpop.f32.mrb[19].mxu1 }
 0x40f   :  { %755 = vst [vmem:[#allocation10 + $0x10] sm:$0xff] %v684_v43 }
 0x411   :  { %v1126_v44 = vpop.f32.mrb[20].mxu1 }
 0x412   :  { %758 = vst [vmem:[#allocation10 + $0x28] sm:$0xff] %v1126_v44  ;;  %v694_v45 = vpop.f32.mrb[21].mxu1 }
 0x413   :  { %757 = vst [vmem:[#allocation10 + $0x20] sm:$0xff] %v694_v45 }
 0x415   :  { %v1129_v46 = vpop.f32.mrb[22].mxu1 }
 0x416   :  { %760 = vst [vmem:[#allocation10 + $0x38] sm:$0xff] %v1129_v46  ;;  %v704_v47 = vpop.f32.mrb[23].mxu1 }
 0x417   :  { %759 = vst [vmem:[#allocation10 + $0x30] sm:$0xff] %v704_v47 }
 0x419   :  { %v1132_v48 = vpop.f32.mrb[24].mxu1 }
 0x41a   :  { %762 = vst [vmem:[#allocation10 + $0x48] sm:$0xff] %v1132_v48  ;;  %v714_v49 = vpop.f32.mrb[25].mxu1 }
 0x41b   :  { %761 = vst [vmem:[#allocation10 + $0x40] sm:$0xff] %v714_v49 }
 0x41d   :  { %v1135_v50 = vpop.f32.mrb[26].mxu1 }
 0x41e   :  { %764 = vst [vmem:[#allocation10 + $0x58] sm:$0xff] %v1135_v50  ;;  %v724_v51 = vpop.f32.mrb[27].mxu1 }
 0x41f   :  { %763 = vst [vmem:[#allocation10 + $0x50] sm:$0xff] %v724_v51 }
 0x421   :  { %v1138_v52 = vpop.f32.mrb[28].mxu1 }
 0x422   :  { %766 = vst [vmem:[#allocation10 + $0x68] sm:$0xff] %v1138_v52  ;;  %v734_v53 = vpop.f32.mrb[29].mxu1 }
 0x423   :  { %765 = vst [vmem:[#allocation10 + $0x60] sm:$0xff] %v734_v53 }
 0x425   :  { %v1141_v54 = vpop.f32.mrb[30].mxu1 }
 0x426   :  { %768 = vst [vmem:[#allocation10 + $0x78] sm:$0xff] %v1141_v54  ;;  %v744_v17 = vpop.f32.mrb[31].mxu1 }
 0x427   :  { %767 = vst [vmem:[#allocation10 + $0x70] sm:$0xff] %v744_v17 }
 0x428   :  { %1376 = shalt.err (!%p1373_p8)
}
 0x429   :  { %s1377_s28 = scalar_lea.hbm %s1602_s6, 2048 }
 0x42a   :  { %p1378_p9 = scmp.ne.s32.totalorder %s1602_s6, %s1377_s28  ;;  %p1381_p10 = scmp.lt.u32.totalorder %s1377_s28, %s1602_s6 }
 0x42c   :  { %p1383_p11 = pnand %p1381_p10, %p1378_p9 }
 0x42e   :  { %1386 = shalt.err (!%p1383_p11)
}
 0x42f   :  { %780 = dma.vmem_to_hbm [thread:$0]  %s775_s23, 2048, %s1602_s6, [#allocation4], %s1397_s9, %s1397_s9, %s1398_s10  }
 0x430   :  { %1393 = dma.done.wait [#allocation4], 2048  }
 0x431   :  { %1394 = vsyncadd [#allocation4], 4294965248 }
 0x432   :  { %784 = vsyncpa [#allocation3], 1 }
 0x433   :  { %785 = vsyncpa [#allocation6], 1 }
 0x434   :  { %786 = vsyncpa [#allocation9], 1 }
 0x435   :  { %787 = vsyncpa [#allocation4], 1 }

</bundles_post_ra>
